<compile_context>
chip_gen: v5e
topology: v5e:2x2
jax: 0.10.0
libtpu: 0.0.40
codegen_flags: <defaults>
</compile_context>

<pallas_src>
import functools

import jax
import jax.numpy as jnp
import numpy as np
from jax.experimental import pallas as pl
from jax.experimental.pallas import tpu as pltpu


def policy_kernel(x_ref, w1_ref, b1_ref, w2_ref, b2_ref, out_ref):
    # fc1 (bf16 MXU inputs, f32 accumulate) + bias + ReLU in f32
    h = jnp.dot(x_ref[...], w1_ref[...], preferred_element_type=jnp.float32)
    h = jnp.maximum(h + b1_ref[...], 0.0)

    # fc2: action axis is padded to a lane-dense 128; padded weight columns are
    # zero and the padded bias entries are -1e30, so those lanes softmax to 0.
    logits = jnp.dot(h.astype(jnp.bfloat16), w2_ref[...],
                     preferred_element_type=jnp.float32) + b2_ref[...]

    # Numerically-stabilized softmax along the lane axis.  Exact f32 divide so
    # rows sum to 1 to f32 precision (approx reciprocal was ~0.3% off).
    m = jnp.max(logits, axis=-1, keepdims=True)
    e = jnp.exp(logits - m)
    s = jnp.sum(e, axis=-1, keepdims=True)
    out_ref[...] = e / s

    # TODO(synk): optionally fuse categorical sampling / log-prob (Policy.act)
    # into this epilogue to avoid a second tiny XLA op on the probs.


@functools.partial(jax.jit, static_argnames=("tm", "a_pad"))
def policy_forward(x, w1, b1, w2, b2, *, tm=128, a_pad=128):
    B, S = x.shape
    H = w1.shape[1]
    A = w2.shape[1]

    # Pad the batch up to a multiple of the batch tile.
    n_tiles = pl.cdiv(B, tm)
    b_pad = n_tiles * tm
    if b_pad != B:
        x = jnp.pad(x, ((0, b_pad - B), (0, 0)))

    # Lane-dense action axis: zero weight columns, very negative bias so the
    # padded lanes contribute exactly 0 probability.
    w2p = jnp.pad(w2, ((0, 0), (0, a_pad - A)))
    b2p = jnp.pad(b2, ((0, 0), (0, a_pad - A)), constant_values=-1e30)

    # bf16 MXU inputs (halves DMA bytes and matmul passes on v6e/v7x); biases
    # and all elementwise/softmax math remain f32.
    xb = x.astype(jnp.bfloat16)
    w1b = w1.astype(jnp.bfloat16)
    w2b = w2p.astype(jnp.bfloat16)

    vmem = pltpu.MemorySpace.VMEM
    cost = pl.CostEstimate(
        flops=2 * b_pad * (S * H + H * a_pad),
        transcendentals=b_pad * a_pad,
        bytes_accessed=2 * (b_pad * S + S * H + H * a_pad)
        + 4 * (H + a_pad + b_pad * a_pad),
    )

    out_pad = pl.pallas_call(
        policy_kernel,
        out_shape=jax.ShapeDtypeStruct((b_pad, a_pad), jnp.float32),
        grid_spec=pltpu.PrefetchScalarGridSpec(
            num_scalar_prefetch=0,
            grid=(n_tiles,),
            in_specs=[
                pl.BlockSpec((tm, S), lambda i: (i, 0), memory_space=vmem),
                pl.BlockSpec((S, H), lambda i: (0, 0), memory_space=vmem),
                pl.BlockSpec((1, H), lambda i: (0, 0), memory_space=vmem),
                pl.BlockSpec((H, a_pad), lambda i: (0, 0), memory_space=vmem),
                pl.BlockSpec((1, a_pad), lambda i: (0, 0), memory_space=vmem),
            ],
            out_specs=pl.BlockSpec((tm, a_pad), lambda i: (i, 0),
                                   memory_space=vmem),
        ),
        compiler_params=pltpu.CompilerParams(
            dimension_semantics=("parallel",)),
        cost_estimate=cost,
    )(xb, w1b, b1, w2b, b2p)

    return out_pad[:B, :A]


def reference_forward(x, w1, b1, w2, b2, *, mixed=False):
    if mixed:
        h = jnp.dot(x.astype(jnp.bfloat16), w1.astype(jnp.bfloat16),
                    preferred_element_type=jnp.float32)
    else:
        h = x @ w1
    h = jnp.maximum(h + b1, 0.0)
    if mixed:
        logits = jnp.dot(h.astype(jnp.bfloat16), w2.astype(jnp.bfloat16),
                         preferred_element_type=jnp.float32)
    else:
        logits = h @ w2
    return jax.nn.softmax(logits + b2, axis=1)


if __name__ == "__main__":
    # Freeway-ramDeterministic-v4: observation is 128-dim RAM, 3 actions.
    # Batch a rollout's worth of states so the grid/MXU actually gets work.
    B = 256          # batch of states
    STATE = 128      # state_space
    H = 32           # h_size
    ACT = 3          # action_space

    key = jax.random.PRNGKey(0)
    k_x, k_w1, k_b1, k_w2, k_b2 = jax.random.split(key, 5)

    x = jax.random.normal(k_x, (B, STATE), dtype=jnp.float32)
    # Deterministic synthetic parameters (shapes match nn.Linear(state, h) /
    # nn.Linear(h, act), stored transposed).
    w1 = jax.random.normal(k_w1, (STATE, H), dtype=jnp.float32) * 0.05
    b1 = jax.random.normal(k_b1, (1, H), dtype=jnp.float32) * 0.05
    w2 = jax.random.normal(k_w2, (H, ACT), dtype=jnp.float32) * 0.05
    b2 = jax.random.normal(k_b2, (1, ACT), dtype=jnp.float32) * 0.05

    probs = jax.block_until_ready(policy_forward(x, w1, b1, w2, b2))
    assert probs.shape == (B, ACT)

    # Compare against a matched mixed-precision reference (tight) and the pure
    # f32 reference (looser, accounts for bf16 matmul inputs).
    ref_mixed = jax.block_until_ready(
        reference_forward(x, w1, b1, w2, b2, mixed=True))
    ref_f32 = jax.block_until_ready(
        reference_forward(x, w1, b1, w2, b2, mixed=False))

    np.testing.assert_allclose(np.asarray(probs), np.asarray(ref_mixed),
                               atol=2e-3, rtol=2e-3)
    np.testing.assert_allclose(np.asarray(probs), np.asarray(ref_f32),
                               atol=3e-2, rtol=3e-2)
    # rows of a softmax must sum to (approximately) 1 — exact divide in-kernel
    # keeps this at f32 precision.
    np.testing.assert_allclose(np.asarray(probs).sum(axis=1), np.ones(B),
                               atol=1e-3)

    print("KERNEL_OK")
</pallas_src>

<mosaic_0001>
module attributes {stable_mosaic.version = 11 : i64} {
  func.func @policy_kernel(%arg0: i32, %arg1: memref<128x128xbf16, #tpu.memory_space<vmem>>, %arg2: memref<128x32xbf16, #tpu.memory_space<vmem>>, %arg3: memref<1x32xf32, #tpu.memory_space<vmem>>, %arg4: memref<32x128xbf16, #tpu.memory_space<vmem>>, %arg5: memref<1x128xf32, #tpu.memory_space<vmem>>, %arg6: memref<128x128xf32, #tpu.memory_space<vmem>>) attributes {dimension_semantics = [#tpu.dimension_semantics<parallel>], iteration_bounds = array<i64: 2>, scalar_prefetch = 0 : i64, scratch_operands = 0 : i64, tpu.core_type = #tpu.core_type<tc>, window_params = [{transform_indices = @transform_0, window_bounds = array<i64: 128, 128>}, {pipeline_mode = #tpu.pipeline_mode<synchronous>, transform_indices = @transform_1, window_bounds = array<i64: 128, 32>}, {pipeline_mode = #tpu.pipeline_mode<synchronous>, transform_indices = @transform_2, window_bounds = array<i64: 1, 32>}, {pipeline_mode = #tpu.pipeline_mode<synchronous>, transform_indices = @transform_3, window_bounds = array<i64: 32, 128>}, {pipeline_mode = #tpu.pipeline_mode<synchronous>, transform_indices = @transform_4, window_bounds = array<i64: 1, 128>}, {transform_indices = @transform_5, window_bounds = array<i64: 128, 128>}]} {
    %c0 = arith.constant 0 : index
    %c0_0 = arith.constant 0 : index
    %0 = vector.load %arg1[%c0, %c0_0] : memref<128x128xbf16, #tpu.memory_space<vmem>>, vector<128x128xbf16>
    %c0_1 = arith.constant 0 : index
    %c0_2 = arith.constant 0 : index
    %1 = vector.load %arg2[%c0_1, %c0_2] : memref<128x32xbf16, #tpu.memory_space<vmem>>, vector<128x32xbf16>
    %cst = arith.constant dense<0.000000e+00> : vector<128x32xf32>
    %2 = tpu.matmul %0, %1, %cst {dimension_numbers = #tpu.dot_dimension_numbers<[1], [0], [0], [1], [0, 0, 1, 1], [], []>} : vector<128x128xbf16>, vector<128x32xbf16>, vector<128x32xf32> -> vector<128x32xf32>
    %c0_3 = arith.constant 0 : index
    %c0_4 = arith.constant 0 : index
    %3 = vector.load %arg3[%c0_3, %c0_4] : memref<1x32xf32, #tpu.memory_space<vmem>>, vector<1x32xf32>
    %4 = vector.broadcast %3 : vector<1x32xf32> to vector<128x32xf32>
    %5 = arith.addf %2, %4 : vector<128x32xf32>
    %cst_5 = arith.constant 0.000000e+00 : f32
    %6 = vector.broadcast %cst_5 : f32 to vector<128x32xf32>
    %7 = arith.maximumf %5, %6 : vector<128x32xf32>
    %8 = arith.truncf %7 : vector<128x32xf32> to vector<128x32xbf16>
    %c0_6 = arith.constant 0 : index
    %c0_7 = arith.constant 0 : index
    %9 = vector.load %arg4[%c0_6, %c0_7] : memref<32x128xbf16, #tpu.memory_space<vmem>>, vector<32x128xbf16>
    %cst_8 = arith.constant dense<0.000000e+00> : vector<128x128xf32>
    %10 = tpu.matmul %8, %9, %cst_8 {dimension_numbers = #tpu.dot_dimension_numbers<[1], [0], [0], [1], [0, 0, 1, 1], [], []>} : vector<128x32xbf16>, vector<32x128xbf16>, vector<128x128xf32> -> vector<128x128xf32>
    %c0_9 = arith.constant 0 : index
    %c0_10 = arith.constant 0 : index
    %11 = vector.load %arg5[%c0_9, %c0_10] : memref<1x128xf32, #tpu.memory_space<vmem>>, vector<1x128xf32>
    %12 = vector.broadcast %11 : vector<1x128xf32> to vector<128x128xf32>
    %13 = arith.addf %10, %12 : vector<128x128xf32>
    %cst_11 = arith.constant dense<0xFF800000> : vector<128xf32>
    %14 = vector.multi_reduction <maximumf>, %13, %cst_11 [1] : vector<128x128xf32> to vector<128xf32>
    %15 = vector.shape_cast %14 : vector<128xf32> to vector<128x1xf32>
    %16 = vector.broadcast %15 : vector<128x1xf32> to vector<128x128xf32>
    %17 = arith.subf %13, %16 : vector<128x128xf32>
    %18 = math.exp %17 : vector<128x128xf32>
    %cst_12 = arith.constant dense<0.000000e+00> : vector<128xf32>
    %19 = vector.multi_reduction <add>, %18, %cst_12 [1] : vector<128x128xf32> to vector<128xf32>
    %20 = vector.shape_cast %19 : vector<128xf32> to vector<128x1xf32>
    %21 = vector.broadcast %20 : vector<128x1xf32> to vector<128x128xf32>
    %22 = arith.divf %18, %21 : vector<128x128xf32>
    %c0_13 = arith.constant 0 : index
    %c0_14 = arith.constant 0 : index
    %23 = vector.load %arg6[%c0_13, %c0_14] : memref<128x128xf32, #tpu.memory_space<vmem>>, vector<128x128xf32>
    tpu.vector_store %arg6[%c0_13, %c0_14], %22 {strides = array<i32>} : memref<128x128xf32, #tpu.memory_space<vmem>>, vector<128x128xf32>,
    return
  }
  func.func @transform_0(%arg0: i32) -> (i32, i32) {
    %c0_i32 = arith.constant 0 : i32
    %c0_i32_0 = arith.constant 0 : i32
    return %arg0, %c0_i32 : i32, i32
  }
  func.func @transform_1(%arg0: i32) -> (i32, i32) {
    %c0_i32 = arith.constant 0 : i32
    %c0_i32_0 = arith.constant 0 : i32
    %c0_i32_1 = arith.constant 0 : i32
    return %c0_i32, %c0_i32_0 : i32, i32
  }
  func.func @transform_2(%arg0: i32) -> (i32, i32) {
    %c0_i32 = arith.constant 0 : i32
    %c0_i32_0 = arith.constant 0 : i32
    %c0_i32_1 = arith.constant 0 : i32
    return %c0_i32, %c0_i32_0 : i32, i32
  }
  func.func @transform_3(%arg0: i32) -> (i32, i32) {
    %c0_i32 = arith.constant 0 : i32
    %c0_i32_0 = arith.constant 0 : i32
    %c0_i32_1 = arith.constant 0 : i32
    return %c0_i32, %c0_i32_0 : i32, i32
  }
  func.func @transform_4(%arg0: i32) -> (i32, i32) {
    %c0_i32 = arith.constant 0 : i32
    %c0_i32_0 = arith.constant 0 : i32
    %c0_i32_1 = arith.constant 0 : i32
    return %c0_i32, %c0_i32_0 : i32, i32
  }
  func.func @transform_5(%arg0: i32) -> (i32, i32) {
    %c0_i32 = arith.constant 0 : i32
    %c0_i32_0 = arith.constant 0 : i32
    return %arg0, %c0_i32 : i32, i32
  }
}

</mosaic_0001>

<bundles_post_ra>
// kernel: policy_forward.1
= control target key start
LH: loop header
LB: loop body
LE: loop exit
PB: predicated region body
PF: predicated region fallthrough
CT: control target
= control target key end

     0   :  { %s1183_s18 = smov 0   ;;  %s1436_s0 = inlined_call_operand.vmem [shape: bf16[256,128], index: 0, kind: input, shape index: {}]   ;;  %s1437_s1 = inlined_call_operand.vmem [shape: bf16[128,32], index: 1, kind: input, shape index: {}]   ;;  %s1438_s2 = inlined_call_operand.vmem [shape: f32[1,32], index: 2, kind: input, shape index: {}]   ;;  %s1439_s3 = inlined_call_operand.vmem [shape: bf16[32,128], index: 3, kind: input, shape index: {}]   ;;  %s1440_s4 = inlined_call_operand.vmem [shape: f32[1,128], index: 4, kind: input, shape index: {}]   ;;  %s1441_s5 = inlined_call_operand.vmem [shape: f32[256,128], index: 5, kind: output, shape index: {}]  }
   0x1 LB: > { %s952_s19 = sadd.s32 4294967295, %s1151_s18   ;;  %p956_p0 = scmp.ge.s32.totalorder %s1151_s18, 1  ;;  %s1151_s18 = sphi %s1183_s18, %s15_s18  }
   0x2   : > { %p188_p1 = scmp.lt.s32.totalorder %s1151_s18, 3 }
   0x4   : > { %p189_p2 = pnand %p956_p0, %p188_p1 }
   0x5   : > { %s957_s28 = sshll.u32 (!%p189_p2), %s952_s19, 4 }
   0x6   : > { %192 = sbr.rel (%p189_p2) target bundleno = 655 (0x28f), region = 40  ;;  %p217_p3 = scmp.lt.s32.totalorder (!%p189_p2), %s957_s28, 31 }
   0xb   : > { %v1058_v0 = vld [vmem:[%s1437_s1 + $0x38] sm:$0xff]  ;;  %v1057_v1 = vld [vmem:[%s1437_s1 + $0x30] sm:$0xff]  ;;  %v1056_v2 = vld [vmem:[%s1437_s1 + $0x28] sm:$0xff]  ;;  %s1447_s28 = smov (!%p217_p3, %s957_s28), 31  ;;  %vm454_vm0 = vcmask 261120  }
   0xc   : > { %361 = vmatpush.bf16.msra.mxu0 %v1058_v0  ;;  %1061 = vmatpush.bf16.msra.mxu2 %v1058_v0  ;;  %v1055_v3 = vld [vmem:[%s1437_s1 + $0x20] sm:$0xff]  ;;  %v1054_v4 = vld [vmem:[%s1437_s1 + $0x18] sm:$0xff]  ;;  %v1053_v5 = vld [vmem:[%s1437_s1 + $0x10] sm:$0xff]  ;;  %s958_s10 = sshll.u32 %s1447_s28, 2  ;;  %s960_s25 = sshll.u32 %s1447_s28, 3 }
   0xd   : > { %v1052_v6 = vld [vmem:[%s1437_s1 + $0x8] sm:$0xff]  ;;  %v1051_v7 = vld [vmem:[%s1437_s1] sm:$0xff]  ;;  %s220_s15 = scalar_lea.vmem %s1436_s0, %s958_s10  ;;  %s1333_s29 = scalar_lea.vmem %s1441_s5, %s960_s25 }
   0xe   : > { %v1043_v8 = vld [vmem:[%s220_s15] sm:$0xff]  ;;  %v1044_v10 = vld [vmem:[%s220_s15 + $0x8] sm:$0xff]  ;;  %v1045_v12 = vld [vmem:[%s220_s15 + $0x10] sm:$0xff] }
   0xf   : > { %v1047_v9 = vld [vmem:[%s220_s15 + $0x20] sm:$0xff]  ;;  %v1048_v11 = vld [vmem:[%s220_s15 + $0x28] sm:$0xff]  ;;  %v1049_v13 = vld [vmem:[%s220_s15 + $0x30] sm:$0xff] }
  0x10   : > { %362 = vmatpush.bf16.msra.mxu0 %v1057_v1  ;;  %1062 = vmatpush.bf16.msra.mxu2 %v1057_v1  ;;  %v1046_v14 = vld [vmem:[%s220_s15 + $0x18] sm:$0xff]  ;;  %v1060_v16 = vld [vmem:[%s1439_s3 + $0x8] sm:$0xff]  ;;  %v1059_v17 = vld [vmem:[%s1439_s3] sm:$0xff] }
  0x11   : > { %v1050_v15 = vld [vmem:[%s220_s15 + $0x38] sm:$0xff]  ;;  %485 = vmatpush.bf16.msra.mxu1 %v1060_v16  ;;  %1069 = vmatpush.bf16.msra.mxu3 %v1060_v16  ;;  %v1079_v19 = vld [vmem:[%s1438_s2] ss:$0 sm:$0xff] }
  0x14   : > { %363 = vmatpush.bf16.msra.mxu0 %v1056_v2  ;;  %1063 = vmatpush.bf16.msra.mxu2 %v1056_v2 }
  0x15   : > { %486 = vmatpush.bf16.msra.mxu1 %v1059_v17  ;;  %1070 = vmatpush.bf16.msra.mxu3 %v1059_v17 }
  0x18   : > { %364 = vmatpush.bf16.msra.mxu0 %v1055_v3  ;;  %1064 = vmatpush.bf16.msra.mxu2 %v1055_v3 }
  0x1c   : > { %365 = vmatpush.bf16.msra.mxu0 %v1054_v4  ;;  %1065 = vmatpush.bf16.msra.mxu2 %v1054_v4 }
  0x20   : > { %366 = vmatpush.bf16.msra.mxu0 %v1053_v5  ;;  %1066 = vmatpush.bf16.msra.mxu2 %v1053_v5 }
  0x24   : > { %367 = vmatpush.bf16.msra.mxu0 %v1052_v6  ;;  %1067 = vmatpush.bf16.msra.mxu2 %v1052_v6 }
  0x28   : > { %368 = vmatpush.bf16.msra.mxu0 %v1051_v7  ;;  %1068 = vmatpush.bf16.msra.mxu2 %v1051_v7 }
  0x2b   : > { %369 = vmatmul.bf16.vlgmr.msra.gmra.mxu0 %v1043_v8  ;;  %389 = vmatmul.bf16.vlgmr.msra.gmra.mxu2 %v1047_v9 }
  0x3b   : > { %374 = vmatmul.bf16.gmra.mxu0 %v1044_v10  ;;  %394 = vmatmul.bf16.gmra.mxu2 %v1048_v11  ;;  %v1080_v11 = vld [vmem:[%s1440_s4] ss:$0 sm:$0xff] }
  0x4b   : > { %379 = vmatmul.bf16.gmra.mxu0 %v1045_v12  ;;  %399 = vmatmul.bf16.gmra.mxu2 %v1049_v13 }
  0x5b   : > { %384 = vmatmul.bf16.gmra.mxu0 %v1046_v14  ;;  %404 = vmatmul.bf16.gmra.mxu2 %v1050_v15 }
  0xa8   : > { %v370_v18 = vpop.f32.mrf.mxu0 }
  0xa9   : > { %v371_v21 = vadd.f32 %v1079_v19, %v370_v18 }
  0xab   : > { %v410_v25 = vmax.f32 %v371_v21, 0.0 }
  0xae   : > { %v390_v20 = vpop.f32.mrf.mxu2 }
  0xaf   : > { %v391_v22 = vadd.f32 %v1079_v19, %v390_v20 }
  0xb0   : > { %v372_v23 = vpop.f32.mrf.mxu0 }
  0xb1   : > { %v373_v24 = vadd.f32 %v1079_v19, %v372_v23  ;;  %v418_v29 = vmax.f32 %v391_v22, 0.0 }
  0xb3   : > { %v411_v26 = vmax.f32 %v373_v24, 0.0 }
  0xb5   : > { %v426_v27 = vpack.c.bf16 %v411_v26, %v410_v25 }
  0xb6   : > { %v392_v28 = vpop.f32.mrf.mxu2 }
  0xb7   : > { %v393_v30 = vadd.f32 %v1079_v19, %v392_v28  ;;  %1033 = vmatmul.msk.bf16.vlgmr.msra.gmra.mxu1 %vm454_vm0, %v426_v27 }
  0xb8   : > { %v375_v31 = vpop.f32.mrf.mxu0 }
  0xb9   : > { %v419_v32 = vmax.f32 %v393_v30, 0.0  ;;  %v376_v35 = vadd.f32 %v1079_v19, %v375_v31 }
  0xbb   : > { %v430_v33 = vpack.c.bf16 %v419_v32, %v418_v29  ;;  %v412_v38 = vmax.f32 %v376_v35, 0.0 }
  0xbe   : > { %v395_v34 = vpop.f32.mrf.mxu2 }
  0xbf   : > { %v396_v39 = vadd.f32 %v1079_v19, %v395_v34 }
  0xc0   : > { %v377_v36 = vpop.f32.mrf.mxu0 }
  0xc1   : > { %v378_v37 = vadd.f32 %v1079_v19, %v377_v36  ;;  %v420_v43 = vmax.f32 %v396_v39, 0.0 }
  0xc3   : > { %v413_v40 = vmax.f32 %v378_v37, 0.0 }
  0xc5   : > { %v427_v41 = vpack.c.bf16 %v413_v40, %v412_v38 }
  0xc6   : > { %v397_v42 = vpop.f32.mrf.mxu2 }
  0xc7   : > { %v398_v44 = vadd.f32 %v1079_v19, %v397_v42  ;;  %1034 = vmatmul.msk.bf16.gmra.mxu1 %vm454_vm0, %v427_v41 }
  0xc8   : > { %v380_v45 = vpop.f32.mrf.mxu0 }
  0xc9   : > { %v421_v46 = vmax.f32 %v398_v44, 0.0  ;;  %v381_v49 = vadd.f32 %v1079_v19, %v380_v45 }
  0xcb   : > { %v431_v47 = vpack.c.bf16 %v421_v46, %v420_v43  ;;  %v414_v52 = vmax.f32 %v381_v49, 0.0 }
  0xcd   : > { %1038 = vmatmul.msk.bf16.vlgmr.msra.gmra.mxu3 %vm454_vm0, %v431_v47 }
  0xce   : > { %v400_v48 = vpop.f32.mrf.mxu2 }
  0xcf   : > { %v401_v53 = vadd.f32 %v1079_v19, %v400_v48 }
  0xd0   : > { %v382_v50 = vpop.f32.mrf.mxu0 }
  0xd1   : > { %v383_v51 = vadd.f32 %v1079_v19, %v382_v50  ;;  %v422_v57 = vmax.f32 %v401_v53, 0.0 }
  0xd3   : > { %v415_v54 = vmax.f32 %v383_v51, 0.0 }
  0xd5   : > { %v428_v55 = vpack.c.bf16 %v415_v54, %v414_v52 }
  0xd6   : > { %v402_v56 = vpop.f32.mrf.mxu2 }
  0xd7   : > { %v403_v58 = vadd.f32 %v1079_v19, %v402_v56  ;;  %1035 = vmatmul.msk.bf16.gmra.mxu1 %vm454_vm0, %v428_v55 }
  0xd8   : > { %v385_v59 = vpop.f32.mrf.mxu0 }
  0xd9   : > { %v423_v60 = vmax.f32 %v403_v58, 0.0  ;;  %v386_v63 = vadd.f32 %v1079_v19, %v385_v59 }
  0xdb   : > { %v432_v61 = vpack.c.bf16 %v423_v60, %v422_v57  ;;  %v416_v2 = vmax.f32 %v386_v63, 0.0 }
  0xdd   : > { %1039 = vmatmul.msk.bf16.gmra.mxu3 %vm454_vm0, %v432_v61 }
  0xde   : > { %v405_v62 = vpop.f32.mrf.mxu2 }
  0xdf   : > { %v406_v3 = vadd.f32 %v1079_v19, %v405_v62 }
  0xe0   : > { %v387_v0 = vpop.f32.mrf.mxu0 }
  0xe1   : > { %v388_v1 = vadd.f32 %v1079_v19, %v387_v0  ;;  %v424_v7 = vmax.f32 %v406_v3, 0.0 }
  0xe3   : > { %v417_v4 = vmax.f32 %v388_v1, 0.0 }
  0xe5   : > { %v429_v5 = vpack.c.bf16 %v417_v4, %v416_v2 }
  0xe6   : > { %v407_v6 = vpop.f32.mrf.mxu2 }
  0xe7   : > { %v408_v8 = vadd.f32 %v1079_v19, %v407_v6  ;;  %1036 = vmatmul.msk.bf16.gmra.mxu1 %vm454_vm0, %v429_v5 }
  0xe9   : > { %v425_v9 = vmax.f32 %v408_v8, 0.0 }
  0xeb   : > { %v433_v10 = vpack.c.bf16 %v425_v9, %v424_v7 }
  0xed   : > { %1040 = vmatmul.msk.bf16.gmra.mxu3 %vm454_vm0, %v433_v10 }
  0xf7   : > { %1037 = vmatmul.msk.bf16.gmra.mxu1 %vm454_vm0, %v430_v33 }
 0x134   : > { %v488_v12 = vpop.f32.mrf.mxu1 }
 0x135   : > { %v489_v13 = vadd.f32 %v1080_v11, %v488_v12 }
 0x137   : > { %528 = vmax.xlane.f32.xlu0 %v489_v13 }
 0x13c   : > { %v490_v14 = vpop.f32.mrf.mxu1 }
 0x13d   : > { %v491_v15 = vadd.f32 %v1080_v11, %v490_v14 }
 0x13f   : > { %530 = vmax.xlane.f32.xlu0 %v491_v15 }
 0x144   : > { %v493_v16 = vpop.f32.mrf.mxu1 }
 0x145   : > { %v494_v17 = vadd.f32 %v1080_v11, %v493_v16 }
 0x147   : > { %532 = vmax.xlane.f32.xlu1 %v494_v17 }
 0x14c   : > { %v495_v18 = vpop.f32.mrf.mxu1 }
 0x14d   : > { %v496_v19 = vadd.f32 %v1080_v11, %v495_v18 }
 0x14f   : > { %534 = vmax.xlane.f32.xlu1 %v496_v19 }
 0x150   : > { %v513_v20 = vpop.f32.mrf.mxu3 }
 0x151   : > { %v514_v21 = vadd.f32 %v1080_v11, %v513_v20 }
 0x154   : > { %v498_v22 = vpop.f32.mrf.mxu1 }
 0x155   : > { %v1241_v23 = vadd.f32 %v1080_v11, %v498_v22 }
 0x157   : > { %536 = vmax.xlane.f32.xlu2 %v1241_v23  ;;  %548 = vmax.xlane.f32.xlu1 %v514_v21 }
 0x158   : > { %v515_v24 = vpop.f32.mrf.mxu3 }
 0x159   : > { %v516_v26 = vadd.f32 %v1080_v11, %v515_v24 }
 0x15c   : > { %v500_v25 = vpop.f32.mrf.mxu1 }
 0x15d   : > { %v1247_v30 = vadd.f32 %v1080_v11, %v500_v25 }
 0x15f   : > { %550 = vmax.xlane.f32.xlu2 %v516_v26 }
 0x160   : > { %v518_v27 = vpop.f32.mrf.mxu3 }
 0x161   : > { %v1244_v28 = vadd.f32 %v1080_v11, %v518_v27 }
 0x163   : > { %552 = vmax.xlane.f32.xlu0 %v1244_v28 }
 0x164   : > { %v503_v29 = vpop.f32.mrf.mxu1 }
 0x165   : > { %v1250_v31 = vadd.f32 %v1080_v11, %v503_v29 }
 0x167   : > { %538 = vmax.xlane.f32.xlu2 %v1247_v30 }
 0x168   : > { %v520_v34 = vpop.f32.mrf.mxu3 }
 0x169   : > { %v1256_v36 = vadd.f32 %v1080_v11, %v520_v34 }
 0x16b   : > { %540 = vmax.xlane.f32.xlu0 %v1250_v31 }
 0x16c   : > { %v505_v32 = vpop.f32.mrf.mxu1 }
 0x16d   : > { %v1253_v33 = vadd.f32 %v1080_v11, %v505_v32 }
 0x16f   : > { %542 = vmax.xlane.f32.xlu1 %v1253_v33 }
 0x170   : > { %v523_v38 = vpop.f32.mrf.mxu3 }
 0x171   : > { %v1262_v40 = vadd.f32 %v1080_v11, %v523_v38 }
 0x174   : > { %v508_v35 = vpop.f32.mrf.mxu1 }
 0x175   : > { %v1258_v37 = vadd.f32 %v1080_v11, %v508_v35 }
 0x177   : > { %544 = vmax.xlane.f32.xlu2 %v1258_v37  ;;  %554 = vmax.xlane.f32.xlu1 %v1256_v36 }
 0x178   : > { %v525_v42 = vpop.f32.mrf.mxu3 }
 0x179   : > { %v1268_v43 = vadd.f32 %v1080_v11, %v525_v42 }
 0x17c   : > { %v510_v39 = vpop.f32.mrf.mxu1 }
 0x17d   : > { %v1264_v41 = vadd.f32 %v1080_v11, %v510_v39 }
 0x17f   : > { %556 = vmax.xlane.f32.xlu2 %v1262_v40  ;;  %546 = vmax.xlane.f32.xlu0 %v1264_v41 }
 0x187   : > { %558 = vmax.xlane.f32.xlu0 %v1268_v43 }
 0x1aa   : > { %v529_v44 = vpop.xlane.xlu0 %528 }
 0x1ab   : > { %v560_v45 = vsub.f32 %v489_v13, %v529_v44 }
 0x1ad   : > { %v576_v46 = vmul.f32 1.442695, %v560_v45 }
 0x1af   : > { %1081 = vpow2.f32 %v576_v46 }
 0x1b2   : > { %v531_v47 = vpop.xlane.xlu0 %530 }
 0x1b3   : > { %v561_v48 = vsub.f32 %v491_v15, %v531_v47 }
 0x1b5   : > { %v1271_v49 = vpop.eup %1081  ;;  %v578_v50 = vmul.f32 1.442695, %v561_v48 }
 0x1b6   : > { %608 = vadd.xlane.f32.xlu1 %v1271_v49 }
 0x1b7   : > { %1083 = vpow2.f32 %v578_v50 }
 0x1ba   : > { %v533_v51 = vpop.xlane.xlu1 %532 }
 0x1bb   : > { %v562_v52 = vsub.f32 %v494_v17, %v533_v51 }
 0x1bd   : > { %v1274_v53 = vpop.eup %1083  ;;  %v580_v54 = vmul.f32 1.442695, %v562_v52 }
 0x1be   : > { %610 = vadd.xlane.f32.xlu2 %v1274_v53 }
 0x1bf   : > { %1085 = vpow2.f32 %v580_v54 }
 0x1c2   : > { %v535_v55 = vpop.xlane.xlu1 %534 }
 0x1c3   : > { %v563_v56 = vsub.f32 %v496_v19, %v535_v55 }
 0x1c5   : > { %v1277_v57 = vpop.eup %1085  ;;  %v582_v58 = vmul.f32 1.442695, %v563_v56 }
 0x1c6   : > { %612 = vadd.xlane.f32.xlu0 %v1277_v57 }
 0x1c7   : > { %1087 = vpow2.f32 %v582_v58 }
 0x1ca   : > { %v537_v59 = vpop.xlane.xlu2 %536  ;;  %v549_v60 = vpop.xlane.xlu1 %548 }
 0x1cb   : > { %v570_v61 = vsub.f32 %v514_v21, %v549_v60  ;;  %v564_v0 = vsub.f32 %v1241_v23, %v537_v59 }
 0x1cd   : > { %v1280_v62 = vpop.eup %1087  ;;  %v596_v63 = vmul.f32 1.442695, %v570_v61  ;;  %v584_v3 = vmul.f32 1.442695, %v564_v0 }
 0x1ce   : > { %614 = vadd.xlane.f32.xlu1 %v1280_v62 }
 0x1cf   : > { %1089 = vpow2.f32 %v596_v63 }
 0x1d2   : > { %v551_v1 = vpop.xlane.xlu2 %550 }
 0x1d3   : > { %v571_v2 = vsub.f32 %v516_v26, %v551_v1 }
 0x1d5   : > { %v598_v4 = vmul.f32 1.442695, %v571_v2  ;;  %v1284_v5 = vpop.eup %1089 }
 0x1d6   : > { %v553_v6 = vpop.xlane.xlu0 %552  ;;  %628 = vadd.xlane.f32.xlu2 %v1284_v5 }
 0x1d7   : > { %1091 = vpow2.f32 %v598_v4  ;;  %v572_v7 = vsub.f32 %v1244_v28, %v553_v6 }
 0x1d8   : > { %1093 = vpow2.f32 %v584_v3 }
 0x1d9   : > { %v600_v8 = vmul.f32 1.442695, %v572_v7 }
 0x1da   : > { %v539_v9 = vpop.xlane.xlu2 %538 }
 0x1db   : > { %1095 = vpow2.f32 %v600_v8  ;;  %v565_v10 = vsub.f32 %v1247_v30, %v539_v9 }
 0x1dd   : > { %v1289_v11 = vpop.eup %1091  ;;  %v586_v12 = vmul.f32 1.442695, %v565_v10 }
 0x1de   : > { %v1291_v13 = vpop.eup %1093  ;;  %630 = vadd.xlane.f32.xlu0 %v1289_v11  ;;  %v541_v14 = vpop.xlane.xlu0 %540 }
 0x1df   : > { %1097 = vpow2.f32 %v586_v12  ;;  %616 = vadd.xlane.f32.xlu2 %v1291_v13  ;;  %v566_v15 = vsub.f32 %v1250_v31, %v541_v14 }
 0x1e1   : > { %v1296_v16 = vpop.eup %1095  ;;  %v588_v17 = vmul.f32 1.442695, %v566_v15 }
 0x1e2   : > { %v543_v18 = vpop.xlane.xlu1 %542  ;;  %632 = vadd.xlane.f32.xlu1 %v1296_v16 }
 0x1e3   : > { %1099 = vpow2.f32 %v588_v17  ;;  %v567_v19 = vsub.f32 %v1253_v33, %v543_v18 }
 0x1e5   : > { %v1300_v20 = vpop.eup %1097  ;;  %v590_v21 = vmul.f32 1.442695, %v567_v19 }
 0x1e6   : > { %618 = vadd.xlane.f32.xlu0 %v1300_v20 }
 0x1e7   : > { %1101 = vpow2.f32 %v590_v21 }
 0x1e9   : > { %v1303_v22 = vpop.eup %1099 }
 0x1ea   : > { %v545_v23 = vpop.xlane.xlu2 %544  ;;  %v555_v24 = vpop.xlane.xlu1 %554  ;;  %620 = vadd.xlane.f32.xlu1 %v1303_v22 }
 0x1eb   : > { %v568_v25 = vsub.f32 %v1258_v37, %v545_v23  ;;  %v573_v26 = vsub.f32 %v1256_v36, %v555_v24 }
 0x1ed   : > { %v1308_v27 = vpop.eup %1101  ;;  %v592_v28 = vmul.f32 1.442695, %v568_v25  ;;  %v602_v29 = vmul.f32 1.442695, %v573_v26 }
 0x1ee   : > { %622 = vadd.xlane.f32.xlu2 %v1308_v27 }
 0x1ef   : > { %1103 = vpow2.f32 %v592_v28 }
 0x1f0   : > { %1105 = vpow2.f32 %v602_v29 }
 0x1f2   : > { %v557_v30 = vpop.xlane.xlu2 %556  ;;  %v547_v31 = vpop.xlane.xlu0 %546 }
 0x1f3   : > { %v574_v32 = vsub.f32 %v1262_v40, %v557_v30  ;;  %v569_v33 = vsub.f32 %v1264_v41, %v547_v31 }
 0x1f5   : > { %v1313_v34 = vpop.eup %1103  ;;  %v604_v35 = vmul.f32 1.442695, %v574_v32  ;;  %v594_v37 = vmul.f32 1.442695, %v569_v33 }
 0x1f6   : > { %v1315_v38 = vpop.eup %1105  ;;  %624 = vadd.xlane.f32.xlu0 %v1313_v34 }
 0x1f7   : > { %1107 = vpow2.f32 %v604_v35  ;;  %634 = vadd.xlane.f32.xlu2 %v1315_v38 }
 0x1f8   : > { %1109 = vpow2.f32 %v594_v37 }
 0x1fa   : > { %v559_v36 = vpop.xlane.xlu0 %558 }
 0x1fb   : > { %v575_v39 = vsub.f32 %v1268_v43, %v559_v36 }
 0x1fd   : > { %v1320_v42 = vpop.eup %1107  ;;  %v606_v40 = vmul.f32 1.442695, %v575_v39 }
 0x1fe   : > { %v1322_v44 = vpop.eup %1109  ;;  %636 = vadd.xlane.f32.xlu0 %v1320_v42 }
 0x1ff   : > { %1111 = vpow2.f32 %v606_v40  ;;  %626 = vadd.xlane.f32.xlu1 %v1322_v44 }
 0x205   : > { %v1326_v41 = vpop.eup %1111 }
 0x207   : > { %638 = vadd.xlane.f32.xlu1 %v1326_v41 }
 0x229   : > { %v609_v45 = vpop.xlane.xlu1 %608 }
 0x22a   : > { %1113 = vrcp.f32 %v609_v45  ;;  %v651_v50 = vand.u32 2147483648, %v609_v45  ;;  %v649_v52 = vand.u32 2147483647, %v609_v45  ;;  %vm645_vm2 = vweird.f32 %v609_v45 }
 0x22c   : > { %v652_v56 = vor.u32 1.1754944e-38, %v651_v50  ;;  %vm650_vm4 = vcmp.eq.f32.partialorder %v649_v52, 8.507059e+37 }
 0x230   : > { %v1114_v46 = vpop.eup %1113 }
 0x231   : > { %v641_v47 = vmul.f32 %v1114_v46, %v609_v45  ;;  %v611_v43 = vpop.xlane.xlu2 %610  ;;  %vm646_vm1 = vweird.f32 %v1114_v46 }
 0x232   : > { %1115 = vrcp.f32 %v611_v43  ;;  %vm647_vm3 = vmor %vm645_vm2, %vm646_vm1  ;;  %v666_v1 = vand.u32 2147483648, %v611_v43  ;;  %v664_v3 = vand.u32 2147483647, %v611_v43  ;;  %vm660_vm6 = vweird.f32 %v611_v43 }
 0x233   : > { %v642_v48 = vsub.f32 1.0, %v641_v47 }
 0x234   : > { %v667_v7 = vor.u32 1.1754944e-38, %v666_v1  ;;  %vm665_vm8 = vcmp.eq.f32.partialorder %v664_v3, 8.507059e+37 }
 0x235   : > { %v643_v51 = vmul.f32 %v1114_v46, %v642_v48 }
 0x237   : > { %v644_v54 = vadd.f32 %v1114_v46, %v643_v51 }
 0x238   : > { %v1116_v55 = vpop.eup %1115 }
 0x239   : > { %v648_v58 = vsel %vm647_vm3, %v1114_v46, %v644_v54  ;;  %v656_v59 = vmul.f32 %v1116_v55, %v611_v43  ;;  %v613_v60 = vpop.xlane.xlu0 %612  ;;  %vm661_vm5 = vweird.f32 %v1116_v55 }
 0x23a   : > { %v653_v61 = vsel %vm650_vm4, %v652_v56, %v648_v58  ;;  %1117 = vrcp.f32 %v613_v60  ;;  %vm662_vm7 = vmor %vm660_vm6, %vm661_vm5  ;;  %v681_v15 = vand.u32 2147483648, %v613_v60  ;;  %v679_v18 = vand.u32 2147483647, %v613_v60 }
 0x23b   : > { %v654_v63 = vmul.f32 %v1271_v49, %v653_v61  ;;  %v657_v0 = vsub.f32 1.0, %v656_v59  ;;  %vm675_vm10 = vweird.f32 %v613_v60 }
 0x23c   : > { %v682_v23 = vor.u32 1.1754944e-38, %v681_v15  ;;  %vm680_vm12 = vcmp.eq.f32.partialorder %v679_v18, 8.507059e+37 }
 0x23d   : > { %880 = vst [vmem:[%s1333_s29] sm:$0xff] %v654_v63  ;;  %v658_v2 = vmul.f32 %v1116_v55, %v657_v0 }
 0x23f   : > { %v659_v4 = vadd.f32 %v1116_v55, %v658_v2 }
 0x240   : > { %v1118_v6 = vpop.eup %1117 }
 0x241   : > { %v663_v8 = vsel %vm662_vm7, %v1116_v55, %v659_v4  ;;  %v671_v9 = vmul.f32 %v1118_v6, %v613_v60  ;;  %v615_v10 = vpop.xlane.xlu1 %614  ;;  %vm676_vm9 = vweird.f32 %v1118_v6 }
 0x242   : > { %v668_v12 = vsel %vm665_vm8, %v667_v7, %v663_v8  ;;  %1119 = vrcp.f32 %v615_v10  ;;  %vm677_vm11 = vmor %vm675_vm10, %vm676_vm9  ;;  %v696_v30 = vand.u32 2147483648, %v615_v10  ;;  %v694_v32 = vand.u32 2147483647, %v615_v10 }
 0x243   : > { %v669_v49 = vmul.f32 %v1274_v53, %v668_v12  ;;  %v672_v14 = vsub.f32 1.0, %v671_v9  ;;  %vm690_vm14 = vweird.f32 %v615_v10 }
 0x244   : > { %v697_v35 = vor.u32 1.1754944e-38, %v696_v30  ;;  %vm695_vm0 = vcmp.eq.f32.partialorder %v694_v32, 8.507059e+37 }
 0x245   : > { %881 = vst [vmem:[%s1333_s29 + $0x8] sm:$0xff] %v669_v49  ;;  %v673_v17 = vmul.f32 %v1118_v6, %v672_v14 }
 0x247   : > { %v674_v19 = vadd.f32 %v1118_v6, %v673_v17 }
 0x248   : > { %v1120_v21 = vpop.eup %1119 }
 0x249   : > { %v678_v24 = vsel %vm677_vm11, %v1118_v6, %v674_v19  ;;  %v686_v25 = vmul.f32 %v1120_v21, %v615_v10  ;;  %v629_v28 = vpop.xlane.xlu2 %628  ;;  %vm691_vm13 = vweird.f32 %v1120_v21 }
 0x24a   : > { %v683_v26 = vsel %vm680_vm12, %v682_v23, %v678_v24  ;;  %1121 = vrcp.f32 %v629_v28  ;;  %vm692_vm15 = vmor %vm690_vm14, %vm691_vm13  ;;  %v799_v43 = vand.u32 2147483647, %v629_v28  ;;  %v801_v48 = vand.u32 2147483648, %v629_v28 }
 0x24b   : > { %v684_v29 = vmul.f32 %v1277_v57, %v683_v26  ;;  %v687_v53 = vsub.f32 1.0, %v686_v25  ;;  %vm795_vm2 = vweird.f32 %v629_v28 }
 0x24c   : > { %vm800_vm4 = vcmp.eq.f32.partialorder %v799_v43, 8.507059e+37  ;;  %v802_v56 = vor.u32 1.1754944e-38, %v801_v48 }
 0x24d   : > { %882 = vst [vmem:[%s1333_s29 + $0x10] sm:$0xff] %v684_v29  ;;  %v688_v31 = vmul.f32 %v1120_v21, %v687_v53 }
 0x24f   : > { %v689_v33 = vadd.f32 %v1120_v21, %v688_v31 }
 0x250   : > { %v1122_v37 = vpop.eup %1121 }
 0x251   : > { %v693_v36 = vsel %vm692_vm15, %v1120_v21, %v689_v33  ;;  %v631_v39 = vpop.xlane.xlu0 %630  ;;  %v791_v45 = vmul.f32 %v1122_v37, %v629_v28  ;;  %vm796_vm1 = vweird.f32 %v1122_v37 }
 0x252   : > { %v698_v40 = vsel %vm695_vm0, %v697_v35, %v693_v36  ;;  %v617_v46 = vpop.xlane.xlu2 %616  ;;  %1123 = vrcp.f32 %v631_v39  ;;  %vm797_vm3 = vmor %vm795_vm2, %vm796_vm1  ;;  %vm810_vm6 = vweird.f32 %v631_v39  ;;  %v814_v6 = vand.u32 2147483647, %v631_v39 }
 0x253   : > { %v699_v57 = vmul.f32 %v1280_v62, %v698_v40  ;;  %1125 = vrcp.f32 %v617_v46  ;;  %v792_v47 = vsub.f32 1.0, %v791_v45  ;;  %vm705_vm5 = vweird.f32 %v617_v46 }
 0x254   : > { %v709_v61 = vand.u32 2147483647, %v617_v46  ;;  %v711_v0 = vand.u32 2147483648, %v617_v46  ;;  %v816_v7 = vand.u32 2147483648, %v631_v39  ;;  %vm815_vm11 = vcmp.eq.f32.partialorder %v814_v6, 8.507059e+37 }
 0x255   : > { %883 = vst [vmem:[%s1333_s29 + $0x18] sm:$0xff] %v699_v57  ;;  %v1343_v50 = vpop.xlane.xlu1 %632  ;;  %v793_v51 = vmul.f32 %v1122_v37, %v792_v47 }
 0x256   : > { %1127 = vrcp.f32 %v1343_v50  ;;  %v829_v10 = vand.u32 2147483647, %v1343_v50  ;;  %v831_v14 = vand.u32 2147483648, %v1343_v50  ;;  %vm1357_vm9 = vcmp.eq.f32.partialorder %v709_v61, 8.507059e+37 }
 0x257   : > { %v794_v54 = vadd.f32 %v1122_v37, %v793_v51  ;;  %v712_v15 = vor.u32 1.1754944e-38, %v711_v0  ;;  %v817_v23 = vor.u32 1.1754944e-38, %v816_v7  ;;  %vm825_vm12 = vweird.f32 %v1343_v50 }
 0x258   : > { %v1124_v52 = vpop.eup %1123  ;;  %vm1368_vm15 = vcmp.eq.f32.partialorder %v829_v10, 8.507059e+37  ;;  %v832_v31 = vor.u32 1.1754944e-38, %v831_v14 }
 0x259   : > { %v1126_v55 = vpop.eup %1125  ;;  %v806_v62 = vmul.f32 %v1124_v52, %v631_v39  ;;  %v1346_v58 = vpop.xlane.xlu0 %618  ;;  %v798_v59 = vsel %vm797_vm3, %v1122_v37, %v794_v54  ;;  %vm811_vm7 = vweird.f32 %v1124_v52 }
 0x25a   : > { %v701_v60 = vmul.f32 %v1126_v55, %v617_v46  ;;  %1129 = vrcp.f32 %v1346_v58  ;;  %v803_v63 = vsel %vm800_vm4, %v802_v56, %v798_v59  ;;  %vm706_vm8 = vweird.f32 %v1126_v55  ;;  %vm812_vm10 = vmor %vm810_vm6, %vm811_vm7 }
 0x25b   : > { %v807_v1 = vsub.f32 1.0, %v806_v62  ;;  %v804_v3 = vmul.f32 %v1284_v5, %v803_v63  ;;  %vm707_vm13 = vmor %vm705_vm5, %vm706_vm8  ;;  %v724_v40 = vand.u32 2147483647, %v1346_v58  ;;  %v726_v45 = vand.u32 2147483648, %v1346_v58 }
 0x25c   : > { %v1128_v2 = vpop.eup %1127  ;;  %v702_v4 = vsub.f32 1.0, %v701_v60  ;;  %vm720_vm2 = vweird.f32 %v1346_v58 }
 0x25d   : > { %v808_v8 = vmul.f32 %v1124_v52, %v807_v1  ;;  %v821_v9 = vmul.f32 %v1128_v2, %v1343_v50  ;;  %v1352_v12 = vpop.xlane.xlu1 %620  ;;  %890 = vst [vmem:[%s1333_s29 + $0x50] sm:$0xff] %v804_v3  ;;  %vm826_vm14 = vweird.f32 %v1128_v2  ;;  %vm725_vm4 = vcmp.eq.f32.partialorder %v724_v40, 8.507059e+37 }
 0x25e   : > { %v703_v49 = vmul.f32 %v1126_v55, %v702_v4  ;;  %1131 = vrcp.f32 %v1352_v12  ;;  %vm827_vm0 = vmor %vm825_vm12, %vm826_vm14  ;;  %v727_v50 = vor.u32 1.1754944e-38, %v726_v45  ;;  %v741_v51 = vand.u32 2147483648, %v1352_v12 }
 0x25f   : > { %v809_v17 = vadd.f32 %v1124_v52, %v808_v8  ;;  %v822_v18 = vsub.f32 1.0, %v821_v9  ;;  %vm735_vm6 = vweird.f32 %v1352_v12 }
 0x260   : > { %v1130_v19 = vpop.eup %1129  ;;  %v704_v21 = vadd.f32 %v1126_v55, %v703_v49  ;;  %v742_v63 = vor.u32 1.1754944e-38, %v741_v51 }
 0x261   : > { %v813_v24 = vsel %vm812_vm10, %v1124_v52, %v809_v17  ;;  %v823_v25 = vmul.f32 %v1128_v2, %v822_v18  ;;  %v716_v26 = vmul.f32 %v1130_v19, %v1346_v58  ;;  %v1366_v28 = vpop.xlane.xlu2 %622  ;;  %vm721_vm1 = vweird.f32 %v1130_v19 }
 0x262   : > { %v708_v29 = vsel %vm707_vm13, %v1126_v55, %v704_v21  ;;  %v818_v53 = vsel %vm815_vm11, %v817_v23, %v813_v24  ;;  %1133 = vrcp.f32 %v1366_v28  ;;  %vm722_vm3 = vmor %vm720_vm2, %vm721_vm1  ;;  %v739_v55 = vand.u32 2147483647, %v1352_v12 }
 0x263   : > { %v713_v32 = vsel %vm1357_vm9, %v712_v15, %v708_v29  ;;  %v819_v33 = vmul.f32 %v1289_v11, %v818_v53  ;;  %v824_v35 = vadd.f32 %v1128_v2, %v823_v25  ;;  %v717_v37 = vsub.f32 1.0, %v716_v26 }
 0x264   : > { %v1132_v36 = vpop.eup %1131  ;;  %v714_v39 = vmul.f32 %v1291_v13, %v713_v32  ;;  %vm740_vm8 = vcmp.eq.f32.partialorder %v739_v55, 8.507059e+37  ;;  %v756_v3 = vand.u32 2147483648, %v1366_v28  ;;  %v754_v6 = vand.u32 2147483647, %v1366_v28 }
 0x265   : > { %891 = vst [vmem:[%s1333_s29 + $0x58] sm:$0xff] %v819_v33  ;;  %v828_v46 = vsel %vm827_vm0, %v1128_v2, %v824_v35  ;;  %v718_v57 = vmul.f32 %v1130_v19, %v717_v37  ;;  %v731_v11 = vmul.f32 %v1132_v36, %v1352_v12  ;;  %vm736_vm5 = vweird.f32 %v1132_v36 }
 0x266   : > { %884 = vst [vmem:[%s1333_s29 + $0x20] sm:$0xff] %v714_v39  ;;  %v833_v13 = vsel %vm1368_vm15, %v832_v31, %v828_v46  ;;  %vm737_vm7 = vmor %vm735_vm6, %vm736_vm5  ;;  %vm750_vm10 = vweird.f32 %v1366_v28  ;;  %v757_v49 = vor.u32 1.1754944e-38, %v756_v3  ;;  %vm755_vm12 = vcmp.eq.f32.partialorder %v754_v6, 8.507059e+37 }
 0x267   : > { %v834_v47 = vmul.f32 %v1296_v16, %v833_v13  ;;  %v719_v43 = vadd.f32 %v1130_v19, %v718_v57  ;;  %v732_v48 = vsub.f32 1.0, %v731_v11 }
 0x268   : > { %v1134_v62 = vpop.eup %1133 }
 0x269   : > { %892 = vst [vmem:[%s1333_s29 + $0x60] sm:$0xff] %v834_v47  ;;  %v723_v52 = vsel %vm722_vm3, %v1130_v19, %v719_v43  ;;  %v733_v54 = vmul.f32 %v1132_v36, %v732_v48  ;;  %v625_v56 = vpop.xlane.xlu0 %624  ;;  %v746_v61 = vmul.f32 %v1134_v62, %v1366_v28  ;;  %vm751_vm9 = vweird.f32 %v1134_v62 }
 0x26a   : > { %v728_v59 = vsel %vm725_vm4, %v727_v50, %v723_v52  ;;  %v1391_v16 = vpop.xlane.xlu2 %634  ;;  %1135 = vrcp.f32 %v625_v56  ;;  %vm752_vm11 = vmor %vm750_vm10, %vm751_vm9  ;;  %v769_v18 = vand.u32 2147483647, %v625_v56  ;;  %v771_v19 = vand.u32 2147483648, %v625_v56 }
 0x26b   : > { %v729_v58 = vmul.f32 %v1300_v20, %v728_v59  ;;  %v734_v60 = vadd.f32 %v1132_v36, %v733_v54  ;;  %1137 = vrcp.f32 %v1391_v16  ;;  %v747_v1 = vsub.f32 1.0, %v746_v61 }
 0x26c   : > { %v846_v25 = vand.u32 2147483648, %v1391_v16  ;;  %vm765_vm14 = vweird.f32 %v625_v56  ;;  %v844_v28 = vand.u32 2147483647, %v1391_v16  ;;  %vm840_vm0 = vweird.f32 %v1391_v16 }
 0x26d   : > { %885 = vst [vmem:[%s1333_s29 + $0x28] sm:$0xff] %v729_v58  ;;  %v738_v0 = vsel %vm737_vm7, %v1132_v36, %v734_v60  ;;  %v748_v20 = vmul.f32 %v1134_v62, %v747_v1  ;;  %v772_v30 = vor.u32 1.1754944e-38, %v771_v19  ;;  %vm770_vm2 = vcmp.eq.f32.partialorder %v769_v18, 8.507059e+37 }
 0x26e   : > { %v743_v2 = vsel %vm740_vm8, %v742_v63, %v738_v0  ;;  %v847_v35 = vor.u32 1.1754944e-38, %v846_v25  ;;  %vm845_vm4 = vcmp.eq.f32.partialorder %v844_v28, 8.507059e+37 }
 0x26f   : > { %v744_v4 = vmul.f32 %v1303_v22, %v743_v2  ;;  %v749_v8 = vadd.f32 %v1134_v62, %v748_v20 }
 0x270   : > { %v1136_v7 = vpop.eup %1135 }
 0x271   : > { %886 = vst [vmem:[%s1333_s29 + $0x30] sm:$0xff] %v744_v4  ;;  %v761_v9 = vmul.f32 %v1136_v7, %v625_v56  ;;  %v1403_v10 = vpop.xlane.xlu0 %636  ;;  %v1138_v12 = vpop.eup %1137  ;;  %v753_v22 = vsel %vm752_vm11, %v1134_v62, %v749_v8  ;;  %vm766_vm13 = vweird.f32 %v1136_v7 }
 0x272   : > { %v1405_v14 = vpop.xlane.xlu1 %626  ;;  %1139 = vrcp.f32 %v1403_v10  ;;  %v836_v5 = vmul.f32 %v1138_v12, %v1391_v16  ;;  %v758_v17 = vsel %vm755_vm12, %v757_v49, %v753_v22  ;;  %vm841_vm15 = vweird.f32 %v1138_v12  ;;  %vm767_vm1 = vmor %vm765_vm14, %vm766_vm13 }
 0x273   : > { %v762_v15 = vsub.f32 1.0, %v761_v9  ;;  %1141 = vrcp.f32 %v1405_v14  ;;  %v759_v21 = vmul.f32 %v1308_v27, %v758_v17  ;;  %vm842_vm3 = vmor %vm840_vm0, %vm841_vm15  ;;  %v861_v47 = vand.u32 2147483648, %v1403_v10 }
 0x274   : > { %v837_v23 = vsub.f32 1.0, %v836_v5  ;;  %v786_v43 = vand.u32 2147483648, %v1405_v14  ;;  %v859_v50 = vand.u32 2147483647, %v1403_v10  ;;  %vm855_vm7 = vweird.f32 %v1403_v10 }
 0x275   : > { %v763_v24 = vmul.f32 %v1136_v7, %v762_v15  ;;  %887 = vst [vmem:[%s1333_s29 + $0x38] sm:$0xff] %v759_v21  ;;  %vm780_vm8 = vweird.f32 %v1405_v14 }
 0x276   : > { %v838_v26 = vmul.f32 %v1138_v12, %v837_v23  ;;  %v787_v56 = vor.u32 1.1754944e-38, %v786_v43  ;;  %vm860_vm11 = vcmp.eq.f32.partialorder %v859_v50, 8.507059e+37 }
 0x277   : > { %v764_v29 = vadd.f32 %v1136_v7, %v763_v24 }
 0x278   : > { %v1140_v53 = vpop.eup %1139  ;;  %v839_v31 = vadd.f32 %v1138_v12, %v838_v26 }
 0x279   : > { %v768_v32 = vsel %vm767_vm1, %v1136_v7, %v764_v29  ;;  %v851_v27 = vmul.f32 %v1140_v53, %v1403_v10  ;;  %v1142_v33 = vpop.eup %1141  ;;  %vm856_vm5 = vweird.f32 %v1140_v53 }
 0x27a   : > { %v773_v37 = vsel %vm770_vm2, %v772_v30, %v768_v32  ;;  %v639_v36 = vpop.xlane.xlu1 %638  ;;  %v843_v39 = vsel %vm842_vm3, %v1138_v12, %v839_v31  ;;  %v776_v45 = vmul.f32 %v1142_v33, %v1405_v14  ;;  %vm781_vm6 = vweird.f32 %v1142_v33  ;;  %vm857_vm9 = vmor %vm855_vm7, %vm856_vm5 }
 0x27b   : > { %v774_v40 = vmul.f32 %v1313_v34, %v773_v37  ;;  %v848_v46 = vsel %vm845_vm4, %v847_v35, %v843_v39  ;;  %v852_v57 = vsub.f32 1.0, %v851_v27  ;;  %1143 = vrcp.f32 %v639_v36  ;;  %vm782_vm10 = vmor %vm780_vm8, %vm781_vm6 }
 0x27c   : > { %v849_v11 = vmul.f32 %v1315_v38, %v848_v46  ;;  %v777_v13 = vsub.f32 1.0, %v776_v45  ;;  %v784_v34 = vand.u32 2147483647, %v1405_v14  ;;  %v862_v38 = vor.u32 1.1754944e-38, %v861_v47 }
 0x27d   : > { %888 = vst [vmem:[%s1333_s29 + $0x40] sm:$0xff] %v774_v40  ;;  %v853_v48 = vmul.f32 %v1140_v53, %v852_v57  ;;  %v876_v1 = vand.u32 2147483648, %v639_v36  ;;  %v874_v3 = vand.u32 2147483647, %v639_v36  ;;  %vm870_vm14 = vweird.f32 %v639_v36 }
 0x27e   : > { %893 = vst [vmem:[%s1333_s29 + $0x68] sm:$0xff] %v849_v11  ;;  %v778_v51 = vmul.f32 %v1142_v33, %v777_v13  ;;  %vm785_vm12 = vcmp.eq.f32.partialorder %v784_v34, 8.507059e+37 }
 0x27f   : > { %v854_v52 = vadd.f32 %v1140_v53, %v853_v48  ;;  %v877_v20 = vor.u32 1.1754944e-38, %v876_v1  ;;  %vm875_vm0 = vcmp.eq.f32.partialorder %v874_v3, 8.507059e+37 }
 0x280   : > { %v779_v54 = vadd.f32 %v1142_v33, %v778_v51 }
 0x281   : > { %v1144_v55 = vpop.eup %1143  ;;  %v858_v62 = vsel %vm857_vm9, %v1140_v53, %v854_v52 }
 0x282   : > { %v783_v59 = vsel %vm782_vm10, %v1142_v33, %v779_v54  ;;  %v863_v16 = vsel %vm860_vm11, %v862_v38, %v858_v62  ;;  %v866_v58 = vmul.f32 %v1144_v55, %v639_v36  ;;  %vm871_vm13 = vweird.f32 %v1144_v55 }
 0x283   : > { %v788_v60 = vsel %vm785_vm12, %v787_v56, %v783_v59  ;;  %v864_v61 = vmul.f32 %v1320_v42, %v863_v16  ;;  %vm872_vm15 = vmor %vm870_vm14, %vm871_vm13 }
 0x284   : > { %v789_v63 = vmul.f32 %v1322_v44, %v788_v60  ;;  %v867_v0 = vsub.f32 1.0, %v866_v58 }
 0x285   : > { %894 = vst [vmem:[%s1333_s29 + $0x70] sm:$0xff] %v864_v61 }
 0x286   : > { %889 = vst [vmem:[%s1333_s29 + $0x48] sm:$0xff] %v789_v63  ;;  %v868_v2 = vmul.f32 %v1144_v55, %v867_v0 }
 0x288   : > { %v869_v4 = vadd.f32 %v1144_v55, %v868_v2 }
 0x28a   : > { %v873_v6 = vsel %vm872_vm15, %v1144_v55, %v869_v4 }
 0x28b   : > { %v878_v7 = vsel %vm875_vm0, %v877_v20, %v873_v6 }
 0x28c   : > { %v879_v8 = vmul.f32 %v1326_v41, %v878_v7 }
 0x28e   : > { %895 = vst [vmem:[%s1333_s29 + $0x78] sm:$0xff] %v879_v8 }
 0x28f PF: > { %s15_s18 = sadd.s32 1, %s1151_s18  }
 0x290   : > { %p12_p4 = scmp.ge.s32.totalorder %s15_s18, 4  }
 0x292   :  { %14 = sbr.rel (!%p12_p4) target bundleno = 1 (0x1), region = 70 }

</bundles_post_ra>
